<compile_context>
chip_gen: v7x
topology: tpu7x:2x2x1
jax: 0.10.0
libtpu: 0.0.40
codegen_flags: <defaults>
</compile_context>

<pallas_src>
import math
import functools

import jax
import jax.numpy as jnp
from jax import lax
from jax.experimental import pallas as pl
from jax.experimental.pallas import tpu as pltpu


def _arcface_kernel(xn_ref, w_ref, label_ref, out_ref, *,
                    s, cos_m, sin_m, th, mm, easy_margin, ls_eps,
                    out_features, tile_c, mxu_dtype):
    # xn_ref   : (B, D)       pre-normalized input, already in mxu_dtype (resident)
    # w_ref    : (TILE_C, D)  raw weight tile, streamed per grid step
    # label_ref: (B, 1)       int32 labels
    j = pl.program_id(0)

    # Normalize this weight tile: rsqrt-multiply, eps = (1e-12)^2 on the squared norm.
    w = w_ref[...].astype(jnp.float32)
    inv_norm = lax.rsqrt(jnp.maximum(jnp.sum(w * w, axis=-1, keepdims=True), 1e-24))
    wn = (w * inv_norm).astype(mxu_dtype)

    # cosine = xn @ wn^T on the MXU, f32 accumulation.
    cosine = lax.dot_general(
        xn_ref[...], wn,
        dimension_numbers=(((1,), (1,)), ((), ())),
        preferred_element_type=jnp.float32,
    )  # (B, TILE_C) f32

    # Margin math (clamped so cosine^2 > 1 by a ULP never produces NaN).
    sine = jnp.sqrt(jnp.clip(1.0 - cosine * cosine, 0.0, 1.0))
    phi = cosine * cos_m - sine * sin_m
    if easy_margin:
        phi = jnp.where(cosine > 0.0, phi, cosine)
    else:
        phi = jnp.where(cosine > th, phi, cosine - mm)

    # one_hot via iota-compare against the label column, offset for this C tile.
    label = label_ref[...]                                          # (B, 1) int32
    cls = jax.lax.broadcasted_iota(jnp.int32, cosine.shape, 1) + j * tile_c
    one_hot = (cls == label).astype(jnp.float32)
    if ls_eps > 0.0:
        one_hot = (1.0 - ls_eps) * one_hot + ls_eps / out_features

    # out = (one_hot*phi + (1-one_hot)*cosine) * s, simplified blend.
    out = (cosine + one_hot * (phi - cosine)) * s
    out_ref[...] = out.astype(out_ref.dtype)


def _round_up(a, b):
    return ((a + b - 1) // b) * b


def arc_margin_product(x, weight, label, *, s, m, easy_margin, ls_eps,
                       tile_c=512, mxu_dtype=jnp.bfloat16, out_dtype=jnp.float32):
    """JAX/Pallas equivalent of ArcMarginProduct.forward.

    x:      (B, in_features)
    weight: (out_features, in_features)   (same layout as the PyTorch nn.Parameter)
    label:  (B,) int
    returns (B, out_features) in `out_dtype` (float32 by default, matching PyTorch).
    """
    B, D = x.shape
    C, D2 = weight.shape
    assert D == D2

    # Pre-normalize x once in the wrapper (F.normalize semantics: v / max(||v||, 1e-12))
    # and cast to the MXU operand dtype.
    xf = x.astype(jnp.float32)
    xn = xf * lax.rsqrt(jnp.maximum(jnp.sum(xf * xf, axis=-1, keepdims=True), 1e-24))
    xn = xn.astype(mxu_dtype)

    label_col = label.reshape(B, 1).astype(jnp.int32)

    # Choose a lane-dense class tile (multiple of 128) and pad C up to a multiple of it.
    tile_c = max(128, min(int(tile_c), _round_up(C, 128)))
    tile_c = _round_up(tile_c, 128)
    c_pad = _round_up(C, tile_c)
    if c_pad != C:
        weight = jnp.pad(weight, ((0, c_pad - C), (0, 0)))
    grid_c = c_pad // tile_c

    kernel = functools.partial(
        _arcface_kernel,
        s=float(s),
        cos_m=math.cos(m),
        sin_m=math.sin(m),
        th=math.cos(math.pi - m),
        mm=math.sin(math.pi - m) * m,
        easy_margin=bool(easy_margin),
        ls_eps=float(ls_eps),
        out_features=float(C),      # original (unpadded) class count, as in PyTorch
        tile_c=tile_c,
        mxu_dtype=mxu_dtype,
    )

    w_bytes = jnp.dtype(weight.dtype).itemsize
    out = pl.pallas_call(
        kernel,
        out_shape=jax.ShapeDtypeStruct((B, c_pad), out_dtype),
        grid_spec=pltpu.PrefetchScalarGridSpec(
            num_scalar_prefetch=0,
            grid=(grid_c,),
            in_specs=[
                pl.BlockSpec((B, D), lambda j: (0, 0)),        # xn: resident across tiles
                pl.BlockSpec((tile_c, D), lambda j: (j, 0)),   # W: streamed, double-buffered
                pl.BlockSpec((B, 1), lambda j: (0, 0)),        # label column
            ],
            out_specs=pl.BlockSpec((B, tile_c), lambda j: (0, j)),
        ),
        compiler_params=pltpu.CompilerParams(
            dimension_semantics=("parallel",),                 # C tiles independent (v7x 2-TC)
        ),
        cost_estimate=pl.CostEstimate(
            flops=2 * B * c_pad * D,
            transcendentals=B * c_pad + c_pad,
            bytes_accessed=(c_pad * D * w_bytes
                            + B * D * jnp.dtype(xn.dtype).itemsize
                            + B * c_pad * jnp.dtype(out_dtype).itemsize),
        ),
    )(xn, weight, label_col)

    return out[:, :C]


def _reference(x, weight, label, *, s, m, easy_margin, ls_eps,
               mxu_dtype=jnp.float32, precision=None):
    """Pure-JAX reference mirroring the PyTorch code (matmul operand dtype matched)."""
    cos_m, sin_m = math.cos(m), math.sin(m)
    th = math.cos(math.pi - m)
    mm = math.sin(math.pi - m) * m
    xf = x.astype(jnp.float32)
    wf = weight.astype(jnp.float32)
    xn = xf / jnp.maximum(jnp.linalg.norm(xf, axis=1, keepdims=True), 1e-12)
    wn = wf / jnp.maximum(jnp.linalg.norm(wf, axis=1, keepdims=True), 1e-12)
    cosine = jnp.dot(xn.astype(mxu_dtype), wn.astype(mxu_dtype).T,
                     preferred_element_type=jnp.float32, precision=precision)
    sine = jnp.sqrt(jnp.clip(1.0 - cosine * cosine, 0.0, 1.0))
    phi = cosine * cos_m - sine * sin_m
    phi = (jnp.where(cosine > 0, phi, cosine) if easy_margin
           else jnp.where(cosine > th, phi, cosine - mm))
    one_hot = jax.nn.one_hot(label, weight.shape[0], dtype=jnp.float32)
    if ls_eps > 0:
        one_hot = (1 - ls_eps) * one_hot + ls_eps / weight.shape[0]
    return (one_hot * phi + (1.0 - one_hot) * cosine) * s


if __name__ == "__main__":
    # Small shapes: C=384 is not a multiple of the 256 tile -> exercises padding + 2 grid steps.
    B, in_features, out_features = 8, 128, 384
    s, m, easy_margin, ls_eps = 30.0, 0.5, False, 0.1

    key = jax.random.PRNGKey(0)
    kx, kw, kl = jax.random.split(key, 3)

    x = jax.random.normal(kx, (B, in_features), dtype=jnp.float32)
    # Deterministic xavier_uniform_-style init for weight (out_features, in_features).
    bound = math.sqrt(6.0 / (in_features + out_features))
    weight = jax.random.uniform(kw, (out_features, in_features),
                                minval=-bound, maxval=bound, dtype=jnp.float32)
    label = jax.random.randint(kl, (B,), 0, out_features, dtype=jnp.int32)

    # 1) Full-precision MXU path: tight check against a high-precision reference.
    out_f32 = arc_margin_product(x, weight, label, s=s, m=m,
                                 easy_margin=easy_margin, ls_eps=ls_eps,
                                 tile_c=256, mxu_dtype=jnp.float32)
    out_f32 = jax.block_until_ready(out_f32)
    ref_f32 = _reference(x, weight, label, s=s, m=m, easy_margin=easy_margin,
                         ls_eps=ls_eps, mxu_dtype=jnp.float32,
                         precision=lax.Precision.HIGHEST)
    assert out_f32.shape == (B, out_features)
    assert jnp.allclose(out_f32, ref_f32, atol=2e-3, rtol=2e-3), \
        float(jnp.max(jnp.abs(out_f32 - ref_f32)))

    # 2) Default perf config (bf16 MXU operands): check against a bf16-operand reference.
    out_bf16 = arc_margin_product(x, weight, label, s=s, m=m,
                                  easy_margin=easy_margin, ls_eps=ls_eps,
                                  tile_c=256)   # mxu_dtype=bfloat16 by default
    out_bf16 = jax.block_until_ready(out_bf16)
    ref_bf16 = _reference(x, weight, label, s=s, m=m, easy_margin=easy_margin,
                          ls_eps=ls_eps, mxu_dtype=jnp.bfloat16)
    assert out_bf16.shape == (B, out_features)
    assert jnp.allclose(out_bf16, ref_bf16, atol=5e-2, rtol=5e-2), \
        float(jnp.max(jnp.abs(out_bf16 - ref_bf16)))

    print("KERNEL_OK")
</pallas_src>

<mosaic_0001>
module attributes {stable_mosaic.version = 11 : i64} {
  func.func @_arcface_kernel(%arg0: i32, %arg1: memref<8x128xf32, #tpu.memory_space<vmem>>, %arg2: memref<256x128xf32, #tpu.memory_space<vmem>>, %arg3: memref<8x1xi32, #tpu.memory_space<vmem>>, %arg4: memref<8x256xf32, #tpu.memory_space<vmem>>) attributes {dimension_semantics = [#tpu.dimension_semantics<parallel>], iteration_bounds = array<i64: 2>, scalar_prefetch = 0 : i64, scratch_operands = 0 : i64, tpu.core_type = #tpu.core_type<tc>, window_params = [{pipeline_mode = #tpu.pipeline_mode<synchronous>, transform_indices = @transform_0, window_bounds = array<i64: 8, 128>}, {transform_indices = @transform_1, window_bounds = array<i64: 256, 128>}, {pipeline_mode = #tpu.pipeline_mode<synchronous>, transform_indices = @transform_2, window_bounds = array<i64: 8, 1>}, {transform_indices = @transform_3, window_bounds = array<i64: 8, 256>}]} {
    %c0 = arith.constant 0 : index
    %c0_0 = arith.constant 0 : index
    %0 = vector.load %arg2[%c0, %c0_0] : memref<256x128xf32, #tpu.memory_space<vmem>>, vector<256x128xf32>
    %1 = arith.mulf %0, %0 : vector<256x128xf32>
    %cst = arith.constant dense<0.000000e+00> : vector<256xf32>
    %2 = vector.multi_reduction <add>, %1, %cst [1] : vector<256x128xf32> to vector<256xf32>
    %3 = vector.shape_cast %2 : vector<256xf32> to vector<256x1xf32>
    %cst_1 = arith.constant 1.000000e-24 : f32
    %4 = vector.broadcast %cst_1 : f32 to vector<256x1xf32>
    %5 = arith.maximumf %3, %4 : vector<256x1xf32>
    %6 = math.rsqrt %5 : vector<256x1xf32>
    %7 = vector.broadcast %6 : vector<256x1xf32> to vector<256x128xf32>
    %8 = arith.mulf %0, %7 : vector<256x128xf32>
    %c0_2 = arith.constant 0 : index
    %c0_3 = arith.constant 0 : index
    %9 = vector.load %arg1[%c0_2, %c0_3] : memref<8x128xf32, #tpu.memory_space<vmem>>, vector<8x128xf32>
    %cst_4 = arith.constant dense<0.000000e+00> : vector<8x256xf32>
    %10 = tpu.matmul %9, %8, %cst_4 {dimension_numbers = #tpu.dot_dimension_numbers<[1], [1], [0], [0], [0, 0, 1, 0], [], []>} : vector<8x128xf32>, vector<256x128xf32>, vector<8x256xf32> -> vector<8x256xf32>
    %11 = arith.mulf %10, %10 : vector<8x256xf32>
    %cst_5 = arith.constant 1.000000e+00 : f32
    %12 = vector.broadcast %cst_5 : f32 to vector<8x256xf32>
    %13 = arith.subf %12, %11 : vector<8x256xf32>
    %cst_6 = arith.constant 0.000000e+00 : f32
    %cst_7 = arith.constant 1.000000e+00 : f32
    %14 = vector.broadcast %cst_6 : f32 to vector<8x256xf32>
    %15 = arith.maximumf %14, %13 : vector<8x256xf32>
    %16 = vector.broadcast %cst_7 : f32 to vector<8x256xf32>
    %17 = arith.minimumf %16, %15 : vector<8x256xf32>
    %18 = math.sqrt %17 : vector<8x256xf32>
    %cst_8 = arith.constant 0.87758255 : f32
    %19 = vector.broadcast %cst_8 : f32 to vector<8x256xf32>
    %20 = arith.mulf %10, %19 : vector<8x256xf32>
    %cst_9 = arith.constant 0.47942555 : f32
    %21 = vector.broadcast %cst_9 : f32 to vector<8x256xf32>
    %22 = arith.mulf %18, %21 : vector<8x256xf32>
    %23 = arith.subf %20, %22 : vector<8x256xf32>
    %cst_10 = arith.constant -0.87758255 : f32
    %24 = vector.broadcast %cst_10 : f32 to vector<8x256xf32>
    %25 = arith.cmpf ogt, %10, %24 : vector<8x256xf32>
    %cst_11 = arith.constant 0.239712775 : f32
    %26 = vector.broadcast %cst_11 : f32 to vector<8x256xf32>
    %27 = arith.subf %10, %26 : vector<8x256xf32>
    %28 = arith.select %25, %23, %27 : vector<8x256xi1>, vector<8x256xf32>
    %c0_12 = arith.constant 0 : index
    %c0_13 = arith.constant 0 : index
    %29 = vector.load %arg3[%c0_12, %c0_13] : memref<8x1xi32, #tpu.memory_space<vmem>>, vector<8x1xi32>
    %30 = tpu.iota {dimensions = array<i32: 1>} : vector<8x256xi32>
    %c256_i32 = arith.constant 256 : i32
    %31 = arith.muli %arg0, %c256_i32 : i32
    %32 = vector.broadcast %31 : i32 to vector<8x256xi32>
    %33 = arith.addi %30, %32 : vector<8x256xi32>
    %34 = vector.broadcast %29 : vector<8x1xi32> to vector<8x256xi32>
    %35 = arith.cmpi eq, %33, %34 : vector<8x256xi32>
    %36 = arith.extui %35 : vector<8x256xi1> to vector<8x256xi32>
    %37 = arith.sitofp %36 : vector<8x256xi32> to vector<8x256xf32>
    %cst_14 = arith.constant 0.899999976 : f32
    %38 = vector.broadcast %cst_14 : f32 to vector<8x256xf32>
    %39 = arith.mulf %38, %37 : vector<8x256xf32>
    %cst_15 = arith.constant 2.6041668E-4 : f32
    %40 = vector.broadcast %cst_15 : f32 to vector<8x256xf32>
    %41 = arith.addf %39, %40 : vector<8x256xf32>
    %42 = arith.subf %28, %10 : vector<8x256xf32>
    %43 = arith.mulf %41, %42 : vector<8x256xf32>
    %44 = arith.addf %10, %43 : vector<8x256xf32>
    %cst_16 = arith.constant 3.000000e+01 : f32
    %45 = vector.broadcast %cst_16 : f32 to vector<8x256xf32>
    %46 = arith.mulf %44, %45 : vector<8x256xf32>
    %c0_17 = arith.constant 0 : index
    %c0_18 = arith.constant 0 : index
    %47 = vector.load %arg4[%c0_17, %c0_18] : memref<8x256xf32, #tpu.memory_space<vmem>>, vector<8x256xf32>
    tpu.vector_store %arg4[%c0_17, %c0_18], %46 {strides = array<i32>} : memref<8x256xf32, #tpu.memory_space<vmem>>, vector<8x256xf32>,
    return
  }
  func.func @transform_0(%arg0: i32) -> (i32, i32) {
    %c0_i32 = arith.constant 0 : i32
    %c0_i32_0 = arith.constant 0 : i32
    %c0_i32_1 = arith.constant 0 : i32
    return %c0_i32, %c0_i32_0 : i32, i32
  }
  func.func @transform_1(%arg0: i32) -> (i32, i32) {
    %c0_i32 = arith.constant 0 : i32
    %c0_i32_0 = arith.constant 0 : i32
    return %arg0, %c0_i32 : i32, i32
  }
  func.func @transform_2(%arg0: i32) -> (i32, i32) {
    %c0_i32 = arith.constant 0 : i32
    %c0_i32_0 = arith.constant 0 : i32
    %c0_i32_1 = arith.constant 0 : i32
    return %c0_i32, %c0_i32_0 : i32, i32
  }
  func.func @transform_3(%arg0: i32) -> (i32, i32) {
    %c0_i32 = arith.constant 0 : i32
    %c0_i32_0 = arith.constant 0 : i32
    return %c0_i32, %arg0 : i32, i32
  }
}

</mosaic_0001>

<bundles_post_ra>
// kernel: tpu_custom_call.1
= control target key start
LH: loop header
LB: loop body
LE: loop exit
PB: predicated region body
PF: predicated region fallthrough
CT: control target
= control target key end

     0   :  { %8 = vsyncpa [#allocation3], 0  ;;  %s1336_s0 = inlined_call_operand.vmem [shape: f32[8,128], index: 0, kind: input, shape index: {}]   ;;  %s1337_s1 = inlined_call_operand.hbm [shape: f32[512,128], index: 1, kind: input, shape index: {}]   ;;  %s1338_s2 = inlined_call_operand.vmem [shape: s32[8,1], index: 2, kind: input, shape index: {}]   ;;  %s1339_s3 = inlined_call_operand.hbm [shape: f32[8,512], index: 3, kind: output, shape index: {}]  }
   0x1   :  { %10 = vsyncpa [#allocation3 + $0x1], 0 }
   0x2   :  { %11 = vsyncpa [#allocation4], 0 }
   0x3   :  { %13 = vsyncpa [#allocation4 + $0x1], 0  ;;  %s967_s12 = smov 0   ;;  %s969_s13 = smov 0  }
   0x4   :  { %s971_s14 = smov 0   ;;  %s973_s15 = smov 0  }
   0x5 LB: > { %s988_s16 = sadd.s32 4294967295, %s939_s15   ;;  %s637_s17 = sadd.s32 4294967294, %s939_s15   ;;  %s939_s15 = sphi %s973_s15, %s1352_s15   ;;  %s935_s14 = sphi %s971_s14, %s1351_s14   ;;  %s931_s13 = sphi %s969_s13, %s1350_s13   ;;  %s927_s12 = sphi %s967_s12, %s1349_s12  }
   0x6   : > { %s992_s18 = sadd.s32 1, %s939_s15   ;;  %s47_s19 = sadd.s32 1, %s935_s14 }
   0x7   : > { %s44_s20 = ssub.s32 %s939_s15, %s992_s18  ;;  %p54_p0 = scmp.ne.s32.totalorder %s935_s14, %s931_s13 }
   0x8   : > { %p45_p1 = scmp.eq.s32.totalorder %s44_s20, 0  ;;  %p55_p2 = scmp.eq.s32.totalorder %s939_s15, 0 }
   0x9   : > { %p60_p3 = scmp.ne.s32.totalorder %s931_s13, %s927_s12  ;;  %p61_p4 = scmp.eq.s32.totalorder %s988_s16, 0 }
   0xa   : > { %s1004_s21 = scalar_select %p45_p1, %s935_s14, %s47_s19  }
   0xb   : > { %p1006_p5 = por %p55_p2, %p54_p0  ;;  %p1010_p6 = por %p61_p4, %p60_p3 }
   0xc   : > { %p105_p7 = scmp.eq.s32.totalorder %s988_s16, 1  ;;  %p111_p8 = scmp.eq.s32.totalorder %s637_s17, 1 }
   0xd   : > { %p736_p10 = scmp.lt.s32.totalorder %s939_s15, 2  ;;  %s137_s26 = sand.u32 1, %s935_s14  }
   0xe   : > { %p1017_p11 = por %p105_p7, %p54_p0  ;;  %p1021_p12 = por %p111_p8, %p60_p3 }
   0xf   : > { %s656_s27 = sshll.u32 %s939_s15, 12  ;;  %s640_s28 = sshll.u32 %s137_s26, 8 }
  0x10   : > { %s1343_s24 = scalar_select %p1017_p11, 1, 0 }
  0x11   : > { %s1344_s25 = scalar_select %p1021_p12, 1, 0 }
  0x12   : > { %s1030_s4 = scalar_lea.hbm %s1337_s1, %s656_s27  ;;  %s141_s5 = scalar_lea.vmem [#allocation2], %s640_s28 }
  0x13   : > { %s148_s6 = sshll.u32 %s141_s5, 4  ;;  %p1034_p13 = pnand %p736_p10, %p1006_p5  ;;  %s1038_s6 = int_to_ptr.vmem [resolvable:$true] %s148_s6 }
  0x14   : > { %s1040_s8 = scalar_lea.sflag [#allocation3], %s137_s26  ;;  %s843_s9 = scalar_lea.hbm %s1030_s4, 4096 }
  0x15   : > { %p844_p0 = scmp.ne.s32.totalorder %s1030_s4, %s843_s9  ;;  %p845_p1 = pneg %p1034_p13 }
  0x16   : > { %s848_s17 = scalar_lea.hbm %s1337_s1, 8192  ;;  %p849_p4 = scmp.lt.u32.totalorder %s1030_s4, %s1337_s1 }
  0x17   : > { %p846_p2 = pnand %p845_p1, %p844_p0  ;;  %p850_p5 = scmp.lt.u32.totalorder %s848_s17, %s843_s9 }
  0x18   : > { %p852_p8 = scmp.lt.u32.totalorder %s843_s9, %s1030_s4 }
  0x19   : > { %p847_p3 = pneg %p846_p2  ;;  %p851_p7 = por %p850_p5, %p849_p4 }
  0x1b   : > { %p853_p10 = por %p852_p8, %p851_p7 }
  0x1d   : > { %p854_p9 = pnand %p853_p10, %p847_p3 }
  0x1f   : > { %857 = shalt.err (!%p854_p9)
}
  0x20   : > { %s858_s22 = scalar_lea.vmem %s1038_s6, 4096  ;;  %s941_s26 = smov [#allocation2]  }
  0x21   : > { %p859_p0 = scmp.ne.s32.totalorder %s1038_s6, %s858_s22  ;;  %s863_s27 = sshll.u32 %s941_s26, 4  ;;  %s864_s27 = int_to_ptr.vmem [resolvable:$false] %s863_s27 }
  0x22   : > { %s865_s28 = scalar_lea.vmem %s864_s27, 8192  ;;  %p866_p11 = scmp.lt.s32.totalorder %s1038_s6, %s864_s27 }
  0x23   : > { %p861_p2 = pnand %p859_p0, %p845_p1  ;;  %p867_p4 = scmp.lt.s32.totalorder %s865_s28, %s858_s22 }
  0x25   : > { %p862_p12 = pneg %p861_p2  ;;  %p868_p5 = por %p867_p4, %p866_p11 }
  0x27   : > { %p869_p7 = pnand %p868_p5, %p862_p12 }
  0x29   : > { %872 = shalt.err (!%p869_p7)
}
  0x2a   : > { %s942_s29 = smov 128   ;;  %s943_s30 = smov 8  }
  0x2b   : > { %731 = dma.hbm_to_vmem [thread:$0]  (!%p1034_p13), %s1030_s4, 4096, %s1038_s6, %s1040_s8, %s942_s29, %s942_s29, %s943_s30  }
  0x2c   : > { %p643_p9 = scmp.ge.s32.totalorder %s939_s15, 1  ;;  %p156_p1 = scmp.lt.s32.totalorder %s939_s15, 3 }
  0x2e   : > { %p157_p3 = pnand %p643_p9, %p156_p1 }
  0x2f   : > { %s1071_s5 = sand.u32 (!%p157_p3), 1, %s931_s13  }
  0x30   : > { %160 = sbr.rel (%p157_p3) target bundleno = 549 (0x225), region = 32  ;;  %s644_s9 = sshll.u32 (!%p157_p3), %s1071_s5, 8 }
  0x31   : > { %s163_s10 = scalar_lea.sflag (!%p157_p3), [#allocation3], %s1071_s5  ;;  %s1075_s11 = scalar_lea.vmem (!%p157_p3), [#allocation2], %s644_s9 }
  0x37   : > { %918 = dma.done.wait (%p1010_p6), %s163_s10, 4096  }
  0x38   : > { %920 = vsyncadd (%p1010_p6), %s163_s10, 4294963200  ;;  %v1082_v0 = vld [vmem:[%s1075_s11 + $0x80] sm:$0xff]  ;;  %v1088_v2 = vld [vmem:[%s1075_s11 + $0x88] sm:$0xff]  ;;  %s648_s8 = sshll.u32 %s988_s16, 8  ;;  %s645_s17 = sshll.u32 %s1071_s5, 4 }
  0x39   : > { %v1085_v1 = vld [vmem:[%s1075_s11] sm:$0xff]  ;;  %v239_v3 = vmul.f32 %v1082_v0, %v1082_v0  ;;  %v1095_v5 = vld [vmem:[%s1075_s11 + $0x8] sm:$0xff]  ;;  %v240_v6 = vmul.f32 %v1088_v2, %v1088_v2  ;;  %v1102_v8 = vld [vmem:[%s1075_s11 + $0x90] sm:$0xff]  ;;  %s188_s19 = scalar_lea.vmem [#allocation5], %s645_s17  ;;  %s1292_s27 = scalar_lea.hbm %s1339_s3, %s648_s8 }
  0x3a   : > { %v223_v4 = vmul.f32 %v1085_v1, %v1085_v1  ;;  %v224_v7 = vmul.f32 %v1095_v5, %v1095_v5  ;;  %v1105_v9 = vld [vmem:[%s1075_s11 + $0x98] sm:$0xff]  ;;  %v241_v10 = vmul.f32 %v1102_v8, %v1102_v8  ;;  %v1112_v12 = vld [vmem:[%s1075_s11 + $0x10] sm:$0xff]  ;;  %v1122_v16 = vld [vmem:[%s1075_s11 + $0xa0] sm:$0xff]  ;;  %s567_s20 = sshll.u32 %s188_s19, 4  ;;  %s553_s28 = scalar_lea.sflag [#allocation4], %s1071_s5  ;;  %s1294_s20 = int_to_ptr.vmem [resolvable:$true] %s567_s20 }
  0x3b   : > { %287 = vadd.xlane.f32.xlu0 %v239_v3  ;;  %v242_v11 = vmul.f32 %v1105_v9, %v1105_v9  ;;  %v1115_v13 = vld [vmem:[%s1075_s11 + $0x18] sm:$0xff]  ;;  %v225_v14 = vmul.f32 %v1112_v12, %v1112_v12  ;;  %v1125_v17 = vld [vmem:[%s1075_s11 + $0xa8] sm:$0xff]  ;;  %v243_v18 = vmul.f32 %v1122_v16, %v1122_v16  ;;  %v1132_v20 = vld [vmem:[%s1075_s11 + $0x20] sm:$0xff]  ;;  %s873_s29 = scalar_lea.vmem %s1294_s20, 256  ;;  %p1346_p11 = scmp.ne.s32.totalorder %s1343_s24, 0 }
  0x3c   : > { %255 = vadd.xlane.f32.xlu1 %v223_v4  ;;  %v226_v15 = vmul.f32 %v1115_v13, %v1115_v13  ;;  %v244_v19 = vmul.f32 %v1125_v17, %v1125_v17  ;;  %v1135_v21 = vld [vmem:[%s1075_s11 + $0x28] sm:$0xff]  ;;  %v227_v22 = vmul.f32 %v1132_v20, %v1132_v20  ;;  %v1142_v24 = vld [vmem:[%s1075_s11 + $0xb0] sm:$0xff]  ;;  %v1145_v25 = vld [vmem:[%s1075_s11 + $0xb8] sm:$0xff]  ;;  %p874_p6 = scmp.ne.s32.totalorder %s1294_s20, %s873_s29  ;;  %s946_s16 = smov [#allocation5]  }
  0x3d   : > { %v228_v23 = vmul.f32 %v1135_v21, %v1135_v21  ;;  %v245_v26 = vmul.f32 %v1142_v24, %v1142_v24  ;;  %v246_v27 = vmul.f32 %v1145_v25, %v1145_v25  ;;  %v1152_v28 = vld [vmem:[%s1075_s11 + $0x30] sm:$0xff]  ;;  %v1155_v29 = vld [vmem:[%s1075_s11 + $0x38] sm:$0xff]  ;;  %v1162_v32 = vld [vmem:[%s1075_s11 + $0xc0] sm:$0xff]  ;;  %s877_s30 = sshll.u32 %s946_s16, 4  ;;  %s878_s30 = int_to_ptr.vmem [resolvable:$false] %s877_s30 }
  0x3e   : > { %v229_v30 = vmul.f32 %v1152_v28, %v1152_v28  ;;  %v230_v31 = vmul.f32 %v1155_v29, %v1155_v29  ;;  %v1165_v33 = vld [vmem:[%s1075_s11 + $0xc8] sm:$0xff]  ;;  %v247_v34 = vmul.f32 %v1162_v32, %v1162_v32  ;;  %v1172_v36 = vld [vmem:[%s1075_s11 + $0x40] sm:$0xff]  ;;  %v1182_v40 = vld [vmem:[%s1075_s11 + $0xd0] sm:$0xff]  ;;  %p875_p12 = pnand %p874_p6, %p1346_p11  ;;  %s879_s9 = scalar_lea.vmem %s878_s30, 512 }
  0x3f   : > { %289 = vadd.xlane.f32.xlu0 %v240_v6  ;;  %v248_v35 = vmul.f32 %v1165_v33, %v1165_v33  ;;  %v1175_v37 = vld [vmem:[%s1075_s11 + $0x48] sm:$0xff]  ;;  %v231_v38 = vmul.f32 %v1172_v36, %v1172_v36  ;;  %v1185_v41 = vld [vmem:[%s1075_s11 + $0xd8] sm:$0xff]  ;;  %v249_v42 = vmul.f32 %v1182_v40, %v1182_v40  ;;  %v1192_v44 = vld [vmem:[%s1075_s11 + $0x50] sm:$0xff]  ;;  %v944_v6 = vmov 0   ;;  %p880_p8 = scmp.lt.s32.totalorder %s1294_s20, %s878_s30  ;;  %p881_p10 = scmp.lt.s32.totalorder %s879_s9, %s873_s29 }
  0x40   : > { %257 = vadd.xlane.f32.xlu1 %v224_v7  ;;  %v232_v39 = vmul.f32 %v1175_v37, %v1175_v37  ;;  %v250_v43 = vmul.f32 %v1185_v41, %v1185_v41  ;;  %v1195_v45 = vld [vmem:[%s1075_s11 + $0x58] sm:$0xff]  ;;  %v233_v46 = vmul.f32 %v1192_v44, %v1192_v44  ;;  %v1202_v48 = vld [vmem:[%s1075_s11 + $0xe0] sm:$0xff]  ;;  %v1205_v49 = vld [vmem:[%s1075_s11 + $0xe8] sm:$0xff]  ;;  %774 = vset.pattern.permute.xlu0 %v944_v6  ;;  %p876_p13 = pneg %p875_p12 }
  0x41   : > { %v234_v47 = vmul.f32 %v1195_v45, %v1195_v45  ;;  %v251_v50 = vmul.f32 %v1202_v48, %v1202_v48  ;;  %v252_v51 = vmul.f32 %v1205_v49, %v1205_v49  ;;  %v1212_v52 = vld [vmem:[%s1075_s11 + $0x60] sm:$0xff]  ;;  %v1215_v53 = vld [vmem:[%s1075_s11 + $0x68] sm:$0xff]  ;;  %v1222_v56 = vld [vmem:[%s1075_s11 + $0xf0] sm:$0xff]  ;;  %p882_p0 = por %p881_p10, %p880_p8 }
  0x42   : > { %v235_v54 = vmul.f32 %v1212_v52, %v1212_v52  ;;  %v236_v55 = vmul.f32 %v1215_v53, %v1215_v53  ;;  %v1225_v57 = vld [vmem:[%s1075_s11 + $0xf8] sm:$0xff]  ;;  %v253_v58 = vmul.f32 %v1222_v56, %v1222_v56  ;;  %v1232_v60 = vld [vmem:[%s1075_s11 + $0x70] sm:$0xff]  ;;  %v1244_v3 = vld [vmem:[%s1336_s0] sm:$0xff] }
  0x43   : > { %291 = vadd.xlane.f32.xlu0 %v241_v10  ;;  %v254_v59 = vmul.f32 %v1225_v57, %v1225_v57  ;;  %v1235_v61 = vld [vmem:[%s1075_s11 + $0x78] sm:$0xff]  ;;  %v237_v62 = vmul.f32 %v1232_v60, %v1232_v60  ;;  %690 = vmatprep.mubr.f32.mxu0 %v1244_v3  ;;  %v521_v4 = vld [vmem:[%s1338_s2] sm:$0xff]  ;;  %p883_p2 = pnand %p882_p0, %p876_p13 }
  0x44   : > { %293 = vadd.xlane.f32.xlu1 %v242_v11  ;;  %v238_v63 = vmul.f32 %v1235_v61, %v1235_v61 }
  0x47   : > { %259 = vadd.xlane.f32.xlu0 %v225_v14 }
  0x48   : > { %261 = vadd.xlane.f32.xlu1 %v226_v15 }
  0x4b   : > { %295 = vadd.xlane.f32.xlu0 %v243_v18 }
  0x4c   : > { %297 = vadd.xlane.f32.xlu1 %v244_v19 }
  0x4f   : > { %263 = vadd.xlane.f32.xlu0 %v227_v22 }
  0x50   : > { %265 = vadd.xlane.f32.xlu1 %v228_v23 }
  0x53   : > { %299 = vadd.xlane.f32.xlu0 %v245_v26 }
  0x54   : > { %301 = vadd.xlane.f32.xlu1 %v246_v27 }
  0x57   : > { %267 = vadd.xlane.f32.xlu0 %v229_v30 }
  0x58   : > { %269 = vadd.xlane.f32.xlu1 %v230_v31 }
  0x5b   : > { %303 = vadd.xlane.f32.xlu0 %v247_v34 }
  0x5c   : > { %305 = vadd.xlane.f32.xlu1 %v248_v35 }
  0x5f   : > { %271 = vadd.xlane.f32.xlu0 %v231_v38 }
  0x60   : > { %273 = vadd.xlane.f32.xlu1 %v232_v39 }
  0x63   : > { %307 = vadd.xlane.f32.xlu0 %v249_v42 }
  0x64   : > { %309 = vadd.xlane.f32.xlu1 %v250_v43 }
  0x67   : > { %275 = vadd.xlane.f32.xlu0 %v233_v46 }
  0x68   : > { %277 = vadd.xlane.f32.xlu1 %v234_v47 }
  0x6b   : > { %311 = vadd.xlane.f32.xlu0 %v251_v50 }
  0x6c   : > { %313 = vadd.xlane.f32.xlu1 %v252_v51 }
  0x6f   : > { %279 = vadd.xlane.f32.xlu0 %v235_v54 }
  0x70   : > { %281 = vadd.xlane.f32.xlu1 %v236_v55 }
  0x73   : > { %315 = vadd.xlane.f32.xlu0 %v253_v58 }
  0x74   : > { %317 = vadd.xlane.f32.xlu1 %v254_v59 }
  0x77   : > { %283 = vadd.xlane.f32.xlu0 %v237_v62 }
  0x78   : > { %285 = vadd.xlane.f32.xlu1 %v238_v63 }
  0x8d   : > { %530 = vperm.xlu0 %774, %v521_v4  }
  0xc8   : > { %v288_v7 = vpop.xlane.xlu0 %287 }
  0xc9   : > { %v256_v10 = vpop.xlane.xlu1 %255  ;;  %v335_v11 = vmax.f32 %v288_v7, 1e-24 }
  0xca   : > { %v319_v14 = vmax.f32 %v256_v10, 1e-24 }
  0xcb   : > { %775 = vrsqrt.f32 %v335_v11 }
  0xcc   : > { %v290_v15 = vpop.xlane.xlu0 %289  ;;  %777 = vrsqrt.f32 %v319_v14 }
  0xcd   : > { %v258_v18 = vpop.xlane.xlu1 %257  ;;  %v336_v19 = vmax.f32 %v290_v15, 1e-24 }
  0xce   : > { %v320_v22 = vmax.f32 %v258_v18, 1e-24 }
  0xcf   : > { %779 = vrsqrt.f32 %v336_v19 }
  0xd0   : > { %781 = vrsqrt.f32 %v320_v22  ;;  %v292_v23 = vpop.xlane.xlu0 %291 }
  0xd1   : > { %v294_v26 = vpop.xlane.xlu1 %293  ;;  %v337_v27 = vmax.f32 %v292_v23, 1e-24 }
  0xd2   : > { %v338_v30 = vmax.f32 %v294_v26, 1e-24 }
  0xd3   : > { %783 = vrsqrt.f32 %v337_v27 }
  0xd4   : > { %785 = vrsqrt.f32 %v338_v30  ;;  %v260_v31 = vpop.xlane.xlu0 %259 }
  0xd5   : > { %v262_v34 = vpop.xlane.xlu1 %261  ;;  %v321_v35 = vmax.f32 %v260_v31, 1e-24  ;;  %v776_v39 = vpop.eup %775 }
  0xd6   : > { %v322_v38 = vmax.f32 %v262_v34, 1e-24  ;;  %v778_v42 = vpop.eup %777  ;;  %v399_v55 = vmul.f32 %v776_v39, %v1082_v0 }
  0xd7   : > { %787 = vrsqrt.f32 %v321_v35  ;;  %v383_v59 = vmul.f32 %v778_v42, %v1085_v1 }
  0xd8   : > { %789 = vrsqrt.f32 %v322_v38  ;;  %v296_v43 = vpop.xlane.xlu0 %295 }
  0xd9   : > { %v298_v46 = vpop.xlane.xlu1 %297  ;;  %v780_v47 = vpop.eup %779  ;;  %v339_v50 = vmax.f32 %v296_v43, 1e-24 }
  0xda   : > { %v340_v51 = vmax.f32 %v298_v46, 1e-24  ;;  %v782_v54 = vpop.eup %781  ;;  %v400_v58 = vmul.f32 %v780_v47, %v1088_v2 }
  0xdb   : > { %791 = vrsqrt.f32 %v339_v50  ;;  %v384_v62 = vmul.f32 %v782_v54, %v1095_v5 }
  0xdc   : > { %793 = vrsqrt.f32 %v340_v51  ;;  %v264_v63 = vpop.xlane.xlu0 %263  ;;  %v692_v6 = vpack.c.bf16 %v400_v58, %v399_v55 }
  0xdd   : > { %v266_v4 = vpop.xlane.xlu1 %265  ;;  %v784_v7 = vpop.eup %783  ;;  %v323_v10 = vmax.f32 %v264_v63, 1e-24  ;;  %v694_v14 = vpack.c.bf16 %v384_v62, %v383_v59 }
  0xde   : > { %v324_v11 = vmax.f32 %v266_v4, 1e-24  ;;  %v786_v15 = vpop.eup %785  ;;  %693 = vmatprep.subr.bf16.mxu0 %v692_v6  ;;  %v401_v18 = vmul.f32 %v784_v7, %v1102_v8 }
  0xdf   : > { %795 = vrsqrt.f32 %v323_v10  ;;  %695 = vmatpush3.bf16.xpose.msra.mxu0 %v694_v14  ;;  %v402_v0 = vmul.f32 %v786_v15, %v1105_v9 }
  0xe0   : > { %797 = vrsqrt.f32 %v324_v11  ;;  %v300_v1 = vpop.xlane.xlu0 %299 }
  0xe1   : > { %v302_v2 = vpop.xlane.xlu1 %301  ;;  %v788_v5 = vpop.eup %787  ;;  %v341_v19 = vmax.f32 %v300_v1, 1e-24  ;;  %v696_v23 = vpack.c.bf16 %v402_v0, %v401_v18 }
  0xe2   : > { %v342_v22 = vmax.f32 %v302_v2, 1e-24  ;;  %v790_v26 = vpop.eup %789  ;;  %v385_v27 = vmul.f32 %v788_v5, %v1112_v12 }
  0xe3   : > { %799 = vrsqrt.f32 %v341_v19  ;;  %697 = vmatprep.subr.bf16.mxu0 %v696_v23  ;;  %v386_v30 = vmul.f32 %v790_v26, %v1115_v13 }
  0xe4   : > { %801 = vrsqrt.f32 %v342_v22  ;;  %v268_v8 = vpop.xlane.xlu0 %267 }
  0xe5   : > { %v270_v31 = vpop.xlane.xlu1 %269  ;;  %v792_v34 = vpop.eup %791  ;;  %v325_v35 = vmax.f32 %v268_v8, 1e-24  ;;  %v698_v38 = vpack.c.bf16 %v386_v30, %v385_v27 }
  0xe6   : > { %v326_v9 = vmax.f32 %v270_v31, 1e-24  ;;  %v794_v39 = vpop.eup %793  ;;  %v403_v42 = vmul.f32 %v792_v34, %v1122_v16 }
  0xe7   : > { %803 = vrsqrt.f32 %v325_v35  ;;  %699 = vmatpush3.bf16.xpose.msra.mxu0 %v698_v38  ;;  %v404_v43 = vmul.f32 %v794_v39, %v1125_v17 }
  0xe8   : > { %805 = vrsqrt.f32 %v326_v9  ;;  %v304_v12 = vpop.xlane.xlu0 %303 }
  0xe9   : > { %v306_v46 = vpop.xlane.xlu1 %305  ;;  %v796_v47 = vpop.eup %795  ;;  %v343_v50 = vmax.f32 %v304_v12, 1e-24  ;;  %v700_v51 = vpack.c.bf16 %v404_v43, %v403_v42 }
  0xea   : > { %v344_v13 = vmax.f32 %v306_v46, 1e-24  ;;  %v798_v54 = vpop.eup %797  ;;  %v387_v55 = vmul.f32 %v796_v47, %v1132_v20 }
  0xeb   : > { %807 = vrsqrt.f32 %v343_v50  ;;  %701 = vmatprep.subr.bf16.mxu0 %v700_v51  ;;  %v388_v58 = vmul.f32 %v798_v54, %v1135_v21 }
  0xec   : > { %809 = vrsqrt.f32 %v344_v13  ;;  %v272_v16 = vpop.xlane.xlu0 %271 }
  0xed   : > { %v274_v59 = vpop.xlane.xlu1 %273  ;;  %v800_v62 = vpop.eup %799  ;;  %v327_v63 = vmax.f32 %v272_v16, 1e-24  ;;  %v702_v4 = vpack.c.bf16 %v388_v58, %v387_v55 }
  0xee   : > { %v328_v17 = vmax.f32 %v274_v59, 1e-24  ;;  %v802_v6 = vpop.eup %801  ;;  %v405_v7 = vmul.f32 %v800_v62, %v1142_v24 }
  0xef   : > { %811 = vrsqrt.f32 %v327_v63  ;;  %703 = vmatpush3.bf16.xpose.msra.mxu0 %v702_v4  ;;  %v406_v10 = vmul.f32 %v802_v6, %v1145_v25 }
  0xf0   : > { %813 = vrsqrt.f32 %v328_v17  ;;  %v308_v20 = vpop.xlane.xlu0 %307 }
  0xf1   : > { %v310_v11 = vpop.xlane.xlu1 %309  ;;  %v804_v14 = vpop.eup %803  ;;  %v345_v15 = vmax.f32 %v308_v20, 1e-24  ;;  %v704_v18 = vpack.c.bf16 %v406_v10, %v405_v7 }
  0xf2   : > { %v346_v21 = vmax.f32 %v310_v11, 1e-24  ;;  %v806_v0 = vpop.eup %805  ;;  %v389_v1 = vmul.f32 %v804_v14, %v1152_v28 }
  0xf3   : > { %815 = vrsqrt.f32 %v345_v15  ;;  %705 = vmatprep.subr.bf16.mxu0 %v704_v18  ;;  %v390_v2 = vmul.f32 %v806_v0, %v1155_v29 }
  0xf4   : > { %817 = vrsqrt.f32 %v346_v21  ;;  %v276_v24 = vpop.xlane.xlu0 %275 }
  0xf5   : > { %v278_v5 = vpop.xlane.xlu1 %277  ;;  %v808_v19 = vpop.eup %807  ;;  %v329_v22 = vmax.f32 %v276_v24, 1e-24  ;;  %v706_v23 = vpack.c.bf16 %v390_v2, %v389_v1 }
  0xf6   : > { %v330_v25 = vmax.f32 %v278_v5, 1e-24  ;;  %v810_v26 = vpop.eup %809  ;;  %v407_v27 = vmul.f32 %v808_v19, %v1162_v32 }
  0xf7   : > { %819 = vrsqrt.f32 %v329_v22  ;;  %707 = vmatpush3.bf16.xpose.msra.mxu0 %v706_v23  ;;  %v408_v30 = vmul.f32 %v810_v26, %v1165_v33 }
  0xf8   : > { %821 = vrsqrt.f32 %v330_v25  ;;  %v312_v28 = vpop.xlane.xlu0 %311  ;;  %v522_v25 = vlaneseq }
  0xf9   : > { %v314_v8 = vpop.xlane.xlu1 %313  ;;  %v812_v31 = vpop.eup %811  ;;  %v347_v34 = vmax.f32 %v312_v28, 1e-24  ;;  %v708_v35 = vpack.c.bf16 %v408_v30, %v407_v27 }
  0xfa   : > { %v348_v29 = vmax.f32 %v314_v8, 1e-24  ;;  %v814_v9 = vpop.eup %813  ;;  %v391_v38 = vmul.f32 %v812_v31, %v1172_v36  ;;  %v523_v30 = vand.u32 127, %v522_v25 }
  0xfb   : > { %823 = vrsqrt.f32 %v347_v34  ;;  %709 = vmatprep.subr.bf16.mxu0 %v708_v35  ;;  %v392_v39 = vmul.f32 %v814_v9, %v1175_v37  ;;  %v945_v35 = vmov 0.0  }
  0xfc   : > { %825 = vrsqrt.f32 %v348_v29  ;;  %v280_v32 = vpop.xlane.xlu0 %279  ;;  %v524_v31 = vadd.s32 128, %v523_v30 }
  0xfd   : > { %v282_v42 = vpop.xlane.xlu1 %281  ;;  %v816_v43 = vpop.eup %815  ;;  %v331_v12 = vmax.f32 %v280_v32, 1e-24  ;;  %v710_v46 = vpack.c.bf16 %v392_v39, %v391_v38 }
  0xfe   : > { %v332_v33 = vmax.f32 %v282_v42, 1e-24  ;;  %v818_v47 = vpop.eup %817  ;;  %v409_v50 = vmul.f32 %v816_v43, %v1182_v40 }
  0xff   : > { %827 = vrsqrt.f32 %v331_v12  ;;  %711 = vmatpush3.bf16.xpose.msra.mxu0 %v710_v46  ;;  %v410_v13 = vmul.f32 %v818_v47, %v1185_v41 }
 0x100   : > { %829 = vrsqrt.f32 %v332_v33  ;;  %v316_v36 = vpop.xlane.xlu0 %315 }
 0x101   : > { %v318_v51 = vpop.xlane.xlu1 %317  ;;  %v820_v54 = vpop.eup %819  ;;  %v349_v55 = vmax.f32 %v316_v36, 1e-24  ;;  %v712_v58 = vpack.c.bf16 %v410_v13, %v409_v50 }
 0x102   : > { %v350_v37 = vmax.f32 %v318_v51, 1e-24  ;;  %v822_v16 = vpop.eup %821  ;;  %v393_v59 = vmul.f32 %v820_v54, %v1192_v44 }
 0x103   : > { %831 = vrsqrt.f32 %v349_v55  ;;  %713 = vmatprep.subr.bf16.mxu0 %v712_v58  ;;  %v394_v62 = vmul.f32 %v822_v16, %v1195_v45 }
 0x104   : > { %833 = vrsqrt.f32 %v350_v37  ;;  %v284_v40 = vpop.xlane.xlu0 %283 }
 0x105   : > { %v286_v63 = vpop.xlane.xlu1 %285  ;;  %v824_v17 = vpop.eup %823  ;;  %v333_v4 = vmax.f32 %v284_v40, 1e-24  ;;  %v714_v6 = vpack.c.bf16 %v394_v62, %v393_v59 }
 0x106   : > { %v334_v41 = vmax.f32 %v286_v63, 1e-24  ;;  %v826_v7 = vpop.eup %825  ;;  %v411_v10 = vmul.f32 %v824_v17, %v1202_v48 }
 0x107   : > { %835 = vrsqrt.f32 %v333_v4  ;;  %715 = vmatpush3.bf16.xpose.msra.mxu0 %v714_v6  ;;  %v412_v20 = vmul.f32 %v826_v7, %v1205_v49 }
 0x108   : > { %837 = vrsqrt.f32 %v334_v41 }
 0x109   : > { %v828_v44 = vpop.eup %827  ;;  %v716_v11 = vpack.c.bf16 %v412_v20, %v411_v10 }
 0x10a   : > { %v830_v14 = vpop.eup %829  ;;  %v395_v45 = vmul.f32 %v828_v44, %v1212_v52 }
 0x10b   : > { %717 = vmatprep.subr.bf16.mxu0 %v716_v11  ;;  %v396_v15 = vmul.f32 %v830_v14, %v1215_v53 }
 0x10d   : > { %v832_v21 = vpop.eup %831  ;;  %v718_v18 = vpack.c.bf16 %v396_v15, %v395_v45 }
 0x10e   : > { %v834_v0 = vpop.eup %833  ;;  %v413_v1 = vmul.f32 %v832_v21, %v1222_v56 }
 0x10f   : > { %719 = vmatpush3.bf16.xpose.msra.mxu0 %v718_v18  ;;  %v414_v48 = vmul.f32 %v834_v0, %v1225_v57 }
 0x111   : > { %v836_v2 = vpop.eup %835  ;;  %v720_v24 = vpack.c.bf16 %v414_v48, %v413_v1 }
 0x112   : > { %v838_v49 = vpop.eup %837  ;;  %v397_v5 = vmul.f32 %v836_v2, %v1232_v60 }
 0x113   : > { %721 = vmatprep.subr.bf16.mxu0 %v720_v24  ;;  %v398_v52 = vmul.f32 %v838_v49, %v1235_v61  ;;  %v526_v61 = vstv %s648_s8 }
 0x114   : > { %v527_v34 = vadd.s32 %v526_v61, %v523_v30  ;;  %v528_v29 = vadd.s32 %v526_v61, %v524_v31 }
 0x115   : > { %v722_v19 = vpack.c.bf16 %v398_v52, %v397_v5 }
 0x117   : > { %723 = vmatpush3.bf16.xpose.msra.mxu0 %v722_v19 }
 0x11e   : > { %691 = vmatmul.mubr.f32.vlgmr.msra.gmra.mrb[0].mxu0 %v1244_v3  ;;  %v531_v3 = vpop.permute.xlu0 %530 }
 0x11f   : > { %vm532_vm0 = vcmp.eq.s32.totalorder %v527_v34, %v531_v3  ;;  %vm533_vm1 = vcmp.eq.s32.totalorder %v528_v29, %v531_v3 }
 0x120   : > { %v649_v9 = vsel %vm532_vm0, 1.0, %v945_v35  ;;  %v650_v42 = vsel %vm533_vm1, 1.0, %v945_v35 }
 0x121   : > { %v538_v33 = vmul.f32 0.9, %v649_v9  ;;  %v539_v55 = vmul.f32 0.9, %v650_v42 }
 0x123   : > { %v540_v62 = vadd.f32 0.00026041668, %v538_v33  ;;  %v541_v4 = vadd.f32 0.00026041668, %v539_v55 }
 0x1f1   : > { %v482_v53 = vpop.f32.mrb[0].mxu0 }
 0x1f2   : > { %v487_v22 = vmul.f32 %v482_v53, %v482_v53  ;;  %v484_v56 = vpop.f32.mrb[1].mxu0  ;;  %v509_v36 = vmul.f32 0.87758255, %v482_v53  ;;  %v646_v59 = vadd.f32 -0.23971277, %v482_v53 }
 0x1f3   : > { %v488_v23 = vmul.f32 %v484_v56, %v484_v56  ;;  %v510_v37 = vmul.f32 0.87758255, %v484_v56  ;;  %v647_v63 = vadd.f32 -0.23971277, %v484_v56  ;;  %vm515_vm6 = vcmp.gt.f32.partialorder %v482_v53, -0.87758255 }
 0x1f4   : > { %v489_v57 = vsub.f32 1.0, %v487_v22  ;;  %vm516_vm7 = vcmp.gt.f32.partialorder %v484_v56, -0.87758255 }
 0x1f5   : > { %v490_v26 = vsub.f32 1.0, %v488_v23 }
 0x1f6   : > { %v491_v27 = vmax.f32 %v489_v57, 0.0 }
 0x1f7   : > { %v492_v28 = vmax.f32 %v490_v26, 0.0 }
 0x1f8   : > { %v493_v60 = vmin.f32 %v491_v27, 1.0 }
 0x1f9   : > { %v494_v8 = vmin.f32 %v492_v28, 1.0 }
 0x1fa   : > { %839 = vrsqrt.f32 %v493_v60  ;;  %vm497_vm2 = vcmp.eq.f32.partialorder %v493_v60, inf  ;;  %v500_v12 = vand.u32 2147483648, %v493_v60  ;;  %vm499_vm4 = vcmp.eq.f32.partialorder %v493_v60, 0.0 }
 0x1fb   : > { %841 = vrsqrt.f32 %v494_v8  ;;  %vm504_vm3 = vcmp.eq.f32.partialorder %v494_v8, inf  ;;  %v507_v46 = vand.u32 2147483648, %v494_v8  ;;  %vm506_vm5 = vcmp.eq.f32.partialorder %v494_v8, 0.0 }
 0x204   : > { %v840_v38 = vpop.eup %839 }
 0x205   : > { %v842_v39 = vpop.eup %841  ;;  %v496_v32 = vmul.f32 %v840_v38, %v493_v60 }
 0x206   : > { %v503_v43 = vmul.f32 %v842_v39, %v494_v8 }
 0x207   : > { %v498_v47 = vsel %vm497_vm2, %v493_v60, %v496_v32 }
 0x208   : > { %v505_v50 = vsel %vm504_vm3, %v494_v8, %v503_v43  ;;  %v501_v13 = vsel %vm499_vm4, %v500_v12, %v498_v47 }
 0x209   : > { %v508_v51 = vsel %vm506_vm5, %v507_v46, %v505_v50  ;;  %v511_v54 = vmul.f32 0.47942555, %v501_v13 }
 0x20a   : > { %v512_v58 = vmul.f32 0.47942555, %v508_v51 }
 0x20b   : > { %v513_v16 = vsub.f32 %v509_v36, %v511_v54 }
 0x20c   : > { %v514_v40 = vsub.f32 %v510_v37, %v512_v58 }
 0x20d   : > { %v519_v17 = vsel %vm515_vm6, %v513_v16, %v646_v59 }
 0x20e   : > { %v520_v41 = vsel %vm516_vm7, %v514_v40, %v647_v63  ;;  %v542_v6 = vsub.f32 %v519_v17, %v482_v53 }
 0x20f   : > { %v543_v7 = vsub.f32 %v520_v41, %v484_v56 }
 0x210   : > { %v544_v10 = vmul.f32 %v542_v6, %v540_v62 }
 0x211   : > { %v545_v20 = vmul.f32 %v543_v7, %v541_v4 }
 0x212   : > { %v546_v44 = vadd.f32 %v544_v10, %v482_v53 }
 0x213   : > { %v547_v11 = vadd.f32 %v545_v20, %v484_v56 }
 0x214   : > { %v548_v14 = vmul.f32 30.0, %v546_v44 }
 0x215   : > { %v549_v45 = vmul.f32 30.0, %v547_v11 }
 0x216   : > { %550 = vst [vmem:[%s188_s19] sm:$0xff] %v548_v14 }
 0x217   : > { %551 = vst [vmem:[%s188_s19 + $0x8] sm:$0xff] %v549_v45 }
 0x218   : > { %886 = shalt.err (!%p883_p2)
}
 0x219   : > { %s887_s5 = scalar_lea.hbm %s1292_s27, 256  ;;  %s891_s23 = scalar_lea.hbm %s1339_s3, 512 }
 0x21a   : > { %p888_p4 = scmp.ne.s32.totalorder %s1292_s27, %s887_s5  ;;  %p892_p9 = scmp.lt.u32.totalorder %s1292_s27, %s1339_s3 }
 0x21b   : > { %p893_p1 = scmp.lt.u32.totalorder %s891_s23, %s887_s5  ;;  %p895_p6 = scmp.lt.u32.totalorder %s887_s5, %s1292_s27 }
 0x21c   : > { %p889_p5 = pnand %p888_p4, %p1346_p11 }
 0x21d   : > { %p894_p3 = por %p893_p1, %p892_p9 }
 0x21e   : > { %p890_p7 = pneg %p889_p5 }
 0x21f   : > { %p896_p12 = por %p895_p6, %p894_p3 }
 0x221   : > { %p897_p13 = pnand %p896_p12, %p890_p7 }
 0x223   : > { %900 = shalt.err (!%p897_p13)
}
 0x224   : > { %726 = dma.vmem_to_hbm [thread:$0]  (%p1346_p11), %s1294_s20, 256, %s1292_s27, %s553_s28  }
 0x225 PF: > { %s579_s7 = sand.u32 1, %s927_s12   ;;  %p1347_p8 = scmp.ne.s32.totalorder %s1344_s25, 0 }
 0x226   : > { %p1348_p10 = scmp.ge.s32.totalorder %s939_s15, 2  ;;  %s580_s8 = scalar_lea.sflag [#allocation4], %s579_s7 }
 0x228   : > { %p733_p0 = pnand %p1348_p10, %p1347_p8 }
 0x22a   : > { %922 = dma.done.wait (!%p733_p0), %s580_s8, 256  }
 0x22b   : > { %924 = vsyncadd (!%p733_p0), %s580_s8, 4294967040  ;;  %p16_p2 = scmp.ge.s32.totalorder %s992_s18, 4   ;;  %s1349_s12 = smov %s931_s13 }
 0x22c   : > { %s1350_s13 = smov %s935_s14  ;;  %s1351_s14 = smov %s1004_s21 }
 0x22d   : > { %s1352_s15 = smov %s992_s18  ;;  %18 = sbr.rel (!%p16_p2) target bundleno = 5 (0x5), region = 77 }
 0x234   :  { %585 = vsyncpa [#allocation3], 1 }
 0x235   :  { %587 = vsyncpa [#allocation3 + $0x1], 1 }
 0x236   :  { %588 = vsyncpa [#allocation4], 1 }
 0x237   :  { %590 = vsyncpa [#allocation4 + $0x1], 1 }

</bundles_post_ra>
